<compile_context>
chip_gen: v6e
topology: v6e:2x2x1
jax: 0.10.0
libtpu: 0.0.40
codegen_flags: <defaults>
</compile_context>

<pallas_src>
import jax
import jax.numpy as jnp
from jax.experimental import pallas as pl
from jax.experimental.pallas import tpu as pltpu

DELTA = 0.5

# Lane widths to try for the lane-dense fast path (largest first, all x128).
_LANE_CANDIDATES = (4096, 2048, 1024, 512, 256, 128)


def huber_kernel(pred_ref, data_ref, out_ref):
    # Keep HBM traffic in the input dtype; do arithmetic in f32 (VPU has huge
    # slack on a mem-bound kernel; matches PyTorch closely for bf16 inputs).
    diff = (pred_ref[...] - data_ref[...]).astype(jnp.float32)
    adiff = jnp.abs(diff)
    quad = 0.5 * diff * diff
    lin = DELTA * (adiff - 0.5 * DELTA)
    out_ref[...] = jnp.where(adiff <= DELTA, quad, lin).astype(out_ref.dtype)


def _target_tile_bytes():
    # v7x: ~3.2 TB/s HBM makes the ~0.35us per-step overhead ~15% at 2 MiB
    # tiles -> use 4 MiB (3 x 2 x 4 MiB = 24 MiB, well inside 64 MiB VMEM).
    # v5e/v6e: 2 MiB tiles keep 3 x 2 x tile within the 16 MiB scoped default.
    try:
        kind = jax.devices()[0].device_kind.lower()
    except Exception:
        kind = ""
    if "v7" in kind or "tpu7" in kind or "7x" in kind:
        return 4 << 20
    return 2 << 20


def _choose_lanes(n):
    for lanes in _LANE_CANDIDATES:
        if n % lanes == 0:
            return lanes
    return None


def _round_up8(x):
    return ((x + 7) // 8) * 8


def _pallas_huber(pf, df, block_shape, grid_len):
    n = pf.size
    itemsize = jnp.dtype(pf.dtype).itemsize
    tile_bytes = itemsize
    for s in block_shape:
        tile_bytes *= s
    # 2 inputs + 1 output, default double-buffering, plus headroom.
    vmem_limit = min(max(6 * tile_bytes + (4 << 20), 16 << 20), 64 << 20)
    cost = pl.CostEstimate(
        flops=5 * n, transcendentals=0, bytes_accessed=3 * n * itemsize
    )
    idx_map = lambda i: (i,) + (0,) * (len(block_shape) - 1)
    return pl.pallas_call(
        huber_kernel,
        out_shape=jax.ShapeDtypeStruct(pf.shape, pf.dtype),
        grid_spec=pltpu.PrefetchScalarGridSpec(
            num_scalar_prefetch=0,
            grid=(grid_len,),
            in_specs=[
                pl.BlockSpec(block_shape, idx_map),
                pl.BlockSpec(block_shape, idx_map),
            ],
            out_specs=pl.BlockSpec(block_shape, idx_map),
        ),
        compiler_params=pltpu.CompilerParams(
            dimension_semantics=("parallel",),
            vmem_limit_bytes=vmem_limit,
        ),
        cost_estimate=cost,
    )(pf, df)


def huber_loss_none(pred, data):
    assert pred.shape == data.shape, "pred/data shape mismatch"
    assert pred.dtype == data.dtype, "pred/data dtype mismatch"
    orig_shape = pred.shape
    n = pred.size
    itemsize = jnp.dtype(pred.dtype).itemsize
    # Byte-based tile budget (identical VMEM footprint across dtypes).
    tile_elems = max(_target_tile_bytes() // itemsize, 1024)

    lanes = _choose_lanes(n)
    if lanes is not None:
        # ---- Fast lane-dense path: no pad, no slice, free reshape. ----
        rows = n // lanes
        pf = pred.reshape(rows, lanes)
        df = data.reshape(rows, lanes)
        target_rows = max(8, (tile_elems // lanes) // 8 * 8)
        tile_rows = min(rows, target_rows)
        # Ensure >= 2 grid blocks when possible so both v7x TCs are used.
        if tile_rows == rows and rows > 8:
            tile_rows = _round_up8((rows + 1) // 2)  # multiple of 8, < rows
        grid_len = pl.cdiv(rows, tile_rows)
        out = _pallas_huber(pf, df, (tile_rows, lanes), grid_len)
        return out.reshape(orig_shape)

    # ---- Ragged path (n % 128 != 0): keep original shape, no pad/slice. ----
    if pred.ndim < 2:
        pf = pred.reshape(1, n)
        df = data.reshape(1, n)
    else:
        pf, df = pred, data
    lead = pf.shape[0]
    rest = 1
    for s in pf.shape[1:]:
        rest *= s
    budget = max(1, tile_elems // max(rest, 1))
    if pf.ndim == 2:
        # leading dim is the sublane dim: must be a multiple of 8 or full.
        if budget >= lead or lead <= 8:
            tile_lead = lead
            if lead > 8:
                tile_lead = _round_up8((lead + 1) // 2)  # >=2 blocks
        else:
            tile_lead = max(8, (budget // 8) * 8)
    else:
        tile_lead = min(lead, budget)
        if tile_lead == lead and lead >= 2:
            tile_lead = (lead + 1) // 2  # >=2 blocks for megacore
    # TODO(synk): a pathological ragged shape whose trailing dims alone exceed
    # VMEM (e.g. a huge prime-length 1-D tensor) would need an in-kernel
    # masked tail instead of the full-trailing-dims block used here.
    block_shape = (tile_lead,) + pf.shape[1:]
    grid_len = pl.cdiv(lead, tile_lead)
    out = _pallas_huber(pf, df, block_shape, grid_len)
    return out.reshape(orig_shape)


def _huber_ref(pred, data):
    diff = pred - data
    adiff = jnp.abs(diff)
    return jnp.where(adiff <= DELTA, 0.5 * diff * diff, DELTA * (adiff - 0.5 * DELTA))


# TODO(synk): gradient_penalty depends on autograd .grad state of an external
# model's parameters; it is not part of forward() and is not translated.


if __name__ == "__main__":
    key = jax.random.PRNGKey(0)
    k1, k2, k3, k4 = jax.random.split(key, 4)

    # Fast path: NCHW-like shape whose element count is a multiple of 128.
    shape = (2, 4, 16, 16)
    pred = jax.random.normal(k1, shape, dtype=jnp.float32)
    data = jax.random.normal(k2, shape, dtype=jnp.float32)
    loss = huber_loss_none(pred, data)
    jax.block_until_ready(loss)
    assert loss.shape == shape
    assert jnp.allclose(loss, _huber_ref(pred, data), atol=1e-6), "fast-path mismatch"

    # Ragged path: element count not a multiple of 128 (no pad / slice used).
    shape_r = (2, 3, 5, 7)
    pred_r = jax.random.normal(k3, shape_r, dtype=jnp.float32)
    data_r = jax.random.normal(k4, shape_r, dtype=jnp.float32)
    loss_r = huber_loss_none(pred_r, data_r)
    jax.block_until_ready(loss_r)
    assert loss_r.shape == shape_r
    assert jnp.allclose(loss_r, _huber_ref(pred_r, data_r), atol=1e-6), "ragged mismatch"

    print("KERNEL_OK")
</pallas_src>

<mosaic_0001>
module attributes {stable_mosaic.version = 11 : i64} {
  func.func @huber_kernel(%arg0: i32, %arg1: memref<1x2048xf32, #tpu.memory_space<vmem>>, %arg2: memref<1x2048xf32, #tpu.memory_space<vmem>>, %arg3: memref<1x2048xf32, #tpu.memory_space<vmem>>) attributes {dimension_semantics = [#tpu.dimension_semantics<parallel>], iteration_bounds = array<i64: 1>, scalar_prefetch = 0 : i64, scratch_operands = 0 : i64, tpu.core_type = #tpu.core_type<tc>, window_params = [{transform_indices = @transform_0, window_bounds = array<i64: 1, 2048>}, {transform_indices = @transform_1, window_bounds = array<i64: 1, 2048>}, {transform_indices = @transform_2, window_bounds = array<i64: 1, 2048>}]} {
    %c0 = arith.constant 0 : index
    %c0_0 = arith.constant 0 : index
    %0 = vector.load %arg1[%c0, %c0_0] : memref<1x2048xf32, #tpu.memory_space<vmem>>, vector<1x2048xf32>
    %c0_1 = arith.constant 0 : index
    %c0_2 = arith.constant 0 : index
    %1 = vector.load %arg2[%c0_1, %c0_2] : memref<1x2048xf32, #tpu.memory_space<vmem>>, vector<1x2048xf32>
    %2 = arith.subf %0, %1 : vector<1x2048xf32>
    %3 = math.absf %2 : vector<1x2048xf32>
    %cst = arith.constant 5.000000e-01 : f32
    %4 = vector.broadcast %cst : f32 to vector<1x2048xf32>
    %5 = arith.mulf %4, %2 : vector<1x2048xf32>
    %6 = arith.mulf %5, %2 : vector<1x2048xf32>
    %cst_3 = arith.constant 2.500000e-01 : f32
    %7 = vector.broadcast %cst_3 : f32 to vector<1x2048xf32>
    %8 = arith.subf %3, %7 : vector<1x2048xf32>
    %cst_4 = arith.constant 5.000000e-01 : f32
    %9 = vector.broadcast %cst_4 : f32 to vector<1x2048xf32>
    %10 = arith.mulf %9, %8 : vector<1x2048xf32>
    %cst_5 = arith.constant 5.000000e-01 : f32
    %11 = vector.broadcast %cst_5 : f32 to vector<1x2048xf32>
    %12 = arith.cmpf ole, %3, %11 : vector<1x2048xf32>
    %13 = arith.select %12, %6, %10 : vector<1x2048xi1>, vector<1x2048xf32>
    %c0_6 = arith.constant 0 : index
    %c0_7 = arith.constant 0 : index
    %14 = vector.load %arg3[%c0_6, %c0_7] : memref<1x2048xf32, #tpu.memory_space<vmem>>, vector<1x2048xf32>
    tpu.vector_store %arg3[%c0_6, %c0_7], %13 {strides = array<i32>} : memref<1x2048xf32, #tpu.memory_space<vmem>>, vector<1x2048xf32>,
    return
  }
  func.func @transform_0(%arg0: i32) -> (i32, i32) {
    %c0_i32 = arith.constant 0 : i32
    %c0_i32_0 = arith.constant 0 : i32
    return %arg0, %c0_i32 : i32, i32
  }
  func.func @transform_1(%arg0: i32) -> (i32, i32) {
    %c0_i32 = arith.constant 0 : i32
    %c0_i32_0 = arith.constant 0 : i32
    return %arg0, %c0_i32 : i32, i32
  }
  func.func @transform_2(%arg0: i32) -> (i32, i32) {
    %c0_i32 = arith.constant 0 : i32
    %c0_i32_0 = arith.constant 0 : i32
    return %arg0, %c0_i32 : i32, i32
  }
}

</mosaic_0001>

<bundles_post_ra>
// kernel: tpu_custom_call.1
= control target key start
LH: loop header
LB: loop body
LE: loop exit
PB: predicated region body
PF: predicated region fallthrough
CT: control target
= control target key end

     0   :  { %7 = vsyncpa [#allocation3], 0  ;;  %s172_s0 = inlined_call_operand.hbm [shape: f32[1,2048], index: 0, kind: input, shape index: {}]   ;;  %s173_s1 = inlined_call_operand.hbm [shape: f32[1,2048], index: 1, kind: input, shape index: {}]   ;;  %s174_s2 = inlined_call_operand.hbm [shape: f32[1,2048], index: 2, kind: output, shape index: {}]  }
   0x1   :  { %8 = vsyncpa [#allocation6], 0 }
   0x2   :  { %9 = vsyncpa [#allocation4], 0  ;;  %s145_s9 = smov [#allocation2]   ;;  %s146_s11 = smov [#allocation5]  }
   0x3   :  { %s16_s10 = sshll.u32 %s145_s9, 4  ;;  %s26_s12 = sshll.u32 %s146_s11, 4  ;;  %s17_s10 = int_to_ptr.vmem [resolvable:$true] %s16_s10  ;;  %s27_s12 = int_to_ptr.vmem [resolvable:$true] %s26_s12 }
   0x4   :  { %s87_s13 = scalar_lea.vmem %s17_s10, 256  ;;  %p92_p1 = scmp.lt.s32.totalorder %s17_s10, %s17_s10 }
   0x5   :  { %p88_p0 = scmp.ne.s32.totalorder %s17_s10, %s87_s13  ;;  %p93_p2 = scmp.lt.s32.totalorder %s87_s13, %s87_s13 }
   0x7   :  { %p94_p3 = por %p93_p2, %p92_p1 }
   0x9   :  { %p95_p4 = pnand %p94_p3, %p88_p0 }
   0xb   :  { %98 = shalt.err (!%p95_p4)
}
   0xc   :  { %19 = dma.hbm_to_vmem [thread:$0]  %s172_s0, 256, %s17_s10, [#allocation3]  }
   0xd   :  { %s107_s16 = scalar_lea.vmem %s27_s12, 256  ;;  %p112_p6 = scmp.lt.s32.totalorder %s27_s12, %s27_s12 }
   0xe   :  { %p108_p5 = scmp.ne.s32.totalorder %s27_s12, %s107_s16  ;;  %p113_p7 = scmp.lt.s32.totalorder %s107_s16, %s107_s16 }
  0x10   :  { %p114_p8 = por %p113_p7, %p112_p6 }
  0x12   :  { %p115_p9 = pnand %p114_p8, %p108_p5 }
  0x14   :  { %118 = shalt.err (!%p115_p9)
}
  0x15   :  { %29 = dma.hbm_to_vmem [thread:$0]  %s173_s1, 256, %s27_s12, [#allocation6]  }
  0x16   :  { %139 = dma.done.wait [#allocation3], 256  }
  0x17   :  { %140 = vsyncadd [#allocation3], 4294967040 }
  0x18   :  { %141 = dma.done.wait [#allocation6], 256  }
  0x19   :  { %142 = vsyncadd [#allocation6], 4294967040  ;;  %v36_v0 = vld [vmem:[#allocation2] sm:$0xff]  ;;  %v38_v1 = vld [vmem:[#allocation5] sm:$0xff]  ;;  %s147_s0 = smov [#allocation7]  }
  0x1a   :  { %v37_v2 = vld [vmem:[#allocation2 + $0x8] sm:$0xff]  ;;  %v40_v3 = vsub.f32 %v36_v0, %v38_v1  ;;  %v39_v4 = vld [vmem:[#allocation5 + $0x8] sm:$0xff]  ;;  %s64_s1 = sshll.u32 %s147_s0, 4  ;;  %s65_s1 = int_to_ptr.vmem [resolvable:$true] %s64_s1 }
  0x1b   :  { %v41_v5 = vsub.f32 %v37_v2, %v39_v4  ;;  %s119_s19 = scalar_lea.vmem %s65_s1, 256  ;;  %p124_p11 = scmp.lt.s32.totalorder %s65_s1, %s65_s1 }
  0x1c   :  { %v42_v6 = vand.u32 2147483647, %v40_v3  ;;  %v44_v7 = vmul.f32 0.5, %v40_v3  ;;  %p120_p10 = scmp.ne.s32.totalorder %s65_s1, %s119_s19  ;;  %p125_p12 = scmp.lt.s32.totalorder %s119_s19, %s119_s19 }
  0x1d   :  { %v43_v8 = vand.u32 2147483647, %v41_v5  ;;  %v45_v9 = vmul.f32 0.5, %v41_v5 }
  0x1e   :  { %v46_v10 = vmul.f32 %v44_v7, %v40_v3  ;;  %v74_v11 = vadd.f32 -0.25, %v42_v6  ;;  %vm52_vm0 = vcmp.le.f32.partialorder %v42_v6, 0.5  ;;  %p126_p13 = por %p125_p12, %p124_p11 }
  0x1f   :  { %v47_v12 = vmul.f32 %v45_v9, %v41_v5  ;;  %v75_v13 = vadd.f32 -0.25, %v43_v8  ;;  %vm53_vm1 = vcmp.le.f32.partialorder %v43_v8, 0.5 }
  0x20   :  { %v50_v14 = vmul.f32 0.5, %v74_v11  ;;  %p127_p0 = pnand %p126_p13, %p120_p10 }
  0x21   :  { %v51_v15 = vmul.f32 0.5, %v75_v13 }
  0x22   :  { %v54_v16 = vsel %vm52_vm0, %v46_v10, %v50_v14 }
  0x23   :  { %56 = vst [vmem:[#allocation7] sm:$0xff] %v54_v16  ;;  %v55_v17 = vsel %vm53_vm1, %v47_v12, %v51_v15 }
  0x24   :  { %57 = vst [vmem:[#allocation7 + $0x8] sm:$0xff] %v55_v17 }
  0x25   :  { %130 = shalt.err (!%p127_p0)
}
  0x26   :  { %67 = dma.vmem_to_hbm [thread:$0]  %s65_s1, 256, %s174_s2, [#allocation4]  }
  0x27   :  { %143 = dma.done.wait [#allocation4], 256  }
  0x28   :  { %144 = vsyncadd [#allocation4], 4294967040 }
  0x29   :  { %71 = vsyncpa [#allocation3], 1 }
  0x2a   :  { %72 = vsyncpa [#allocation6], 1 }
  0x2b   :  { %73 = vsyncpa [#allocation4], 1 }

</bundles_post_ra>
